<compile_context>
chip_gen: v6e
topology: v6e:2x2x1
jax: 0.10.0
libtpu: 0.0.40
codegen_flags: <defaults>
</compile_context>

<pallas_src>
import functools

import jax
import jax.numpy as jnp
from jax import lax
from jax.experimental import pallas as pl
from jax.experimental.pallas import tpu as pltpu


def _rsf_bn_kernel(gamma_ref, beta_ref, x_ref, o_ref, *, eps, inv_count):
    """One grid step owns one BN group: x_ref is (N, 1, rows, lanes) in VMEM."""
    g = pl.program_id(0)
    # Per-group affine scalars, read once from SMEM.
    gamma = gamma_ref[g]
    beta = beta_ref[g]

    # Single f32 materialization of the slab; reused by both moment reduction
    # and the normalize (no second VMEM sweep / cast).
    xf = x_ref[...].astype(jnp.float32)
    s = jnp.sum(xf)
    ss = jnp.sum(xf * xf)

    mean = s * inv_count
    # Single-pass E[x^2] - mean^2 can dip slightly negative from cancellation.
    var = jnp.maximum(ss * inv_count - mean * mean, 0.0)
    a = lax.rsqrt(var + eps) * gamma          # folded scale   (EUP rsqrt)
    b = beta - mean * a                        # folded shift

    # Normalize + affine as one mul + one add per element.
    o_ref[...] = (xf * a + b).astype(o_ref.dtype)


def _best_fold(total):
    """Factor `total` = rows * lanes minimizing occupied (8,128) vregs.

    Any factorization is a free reshape of the contiguous per-group slab.
    Ties prefer lanes that are a multiple of 128 (unmasked vst), then wider
    lanes.
    """
    best_key, best = None, None
    d = 1
    while d * d <= total:
        if total % d == 0:
            for lanes in {d, total // d}:
                rows = total // lanes
                tiles = -(-rows // 8) * -(-lanes // 128)
                key = (tiles, 0 if lanes % 128 == 0 else 1, -lanes)
                if best_key is None or key < best_key:
                    best_key, best = key, (rows, lanes)
        d += 1
    return best


def rsf_bn(x, gamma, beta, rs_num, eps=1e-5):
    """x: (N, C, H, W) NCHW with C % rs_num == 0. gamma/beta: (C // rs_num,)."""
    N, C, H, W = x.shape
    assert C % rs_num == 0, "C must be divisible by rsNum"
    G = C // rs_num
    assert gamma.shape == (G,) and beta.shape == (G,), \
        "gamma/beta must have shape (C // rs_num,)"

    gamma = gamma.astype(jnp.float32)
    beta = beta.astype(jnp.float32)

    # Vreg-dense free reshape of each group's contiguous rsNum*H*W elements.
    total = rs_num * H * W
    rows, lanes = _best_fold(total)
    xv = x.reshape(N, G, rows, lanes)          # contiguous view, no transpose

    block = (N, 1, rows, lanes)                # full N + full group slab per step
    index_map = lambda g: (0, g, 0, 0)

    # VMEM budget: double-buffered in + out, plus the f32 working copy and a
    # couple of fused temporaries.
    itemsize = jnp.dtype(x.dtype).itemsize
    elems = N * rows * lanes
    block_bytes = elems * itemsize
    needed = 4 * block_bytes + 3 * elems * 4 + (2 << 20)
    vmem_limit = None if needed <= (32 << 20) else min(needed, 128 << 20)

    kernel = functools.partial(
        _rsf_bn_kernel, eps=eps, inv_count=1.0 / float(elems))

    cost = pl.CostEstimate(
        flops=6 * N * C * H * W,
        transcendentals=G,
        bytes_accessed=2 * x.size * itemsize,
    )

    out = pl.pallas_call(
        kernel,
        out_shape=jax.ShapeDtypeStruct((N, G, rows, lanes), x.dtype),
        grid_spec=pltpu.PrefetchScalarGridSpec(
            num_scalar_prefetch=0,
            grid=(G,),
            in_specs=[
                pl.BlockSpec(memory_space=pltpu.MemorySpace.SMEM),  # gamma (G,)
                pl.BlockSpec(memory_space=pltpu.MemorySpace.SMEM),  # beta  (G,)
                pl.BlockSpec(block, index_map),                      # x group slab
            ],
            out_specs=pl.BlockSpec(block, index_map),
        ),
        compiler_params=pltpu.CompilerParams(
            dimension_semantics=("parallel",),
            vmem_limit_bytes=vmem_limit,
        ),
        cost_estimate=cost,
    )(gamma, beta, xv)

    # Free contiguous view back to NCHW (matches PyTorch's second reshape).
    return out.reshape(N, C, H, W)


def rsf_bn_reference(x, gamma, beta, rs_num, eps=1e-5):
    N, C, H, W = x.shape
    G = C // rs_num
    xr = x.reshape(N, G, rs_num * H, W).astype(jnp.float32)
    mean = jnp.mean(xr, axis=(0, 2, 3), keepdims=True)
    var = jnp.mean((xr - mean) ** 2, axis=(0, 2, 3), keepdims=True)
    y = (xr - mean) / jnp.sqrt(var + eps)
    y = y * gamma.reshape(1, G, 1, 1) + beta.reshape(1, G, 1, 1)
    return y.reshape(N, C, H, W).astype(x.dtype)


if __name__ == "__main__":
    key = jax.random.PRNGKey(0)

    # --- Test 1: module config (channels=4, rotNum=2, |scaleList|=2) ----------
    channels, rot_num, scale_list = 4, 2, [1.0, 0.5]
    rs_num = rot_num * len(scale_list)               # 4
    N, H, W = 2, 16, 16
    C = channels * rs_num                            # 16
    kx, key = jax.random.split(key)
    x = jax.random.normal(kx, (N, C, H, W), dtype=jnp.float32)
    gamma = jnp.ones((channels,), dtype=jnp.float32)  # nn.BatchNorm2d defaults
    beta = jnp.zeros((channels,), dtype=jnp.float32)

    y = jax.block_until_ready(rsf_bn(x, gamma, beta, rs_num))
    y_ref = rsf_bn_reference(x, gamma, beta, rs_num)
    assert y.shape == (N, C, H, W)
    assert jnp.allclose(y, y_ref, atol=1e-4, rtol=1e-4), "mismatch vs reference (test 1)"

    # --- Test 2: odd spatial size (no 128-multiple fold) + nontrivial affine --
    channels2, rot_num2, scale_list2 = 3, 2, [1.0, 0.7]
    rs_num2 = rot_num2 * len(scale_list2)            # 4
    N2, H2, W2 = 2, 7, 7
    C2 = channels2 * rs_num2                         # 12
    kx2, kg2, kb2, key = jax.random.split(key, 4)
    x2 = jax.random.normal(kx2, (N2, C2, H2, W2), dtype=jnp.float32)
    gamma2 = 1.0 + 0.1 * jax.random.normal(kg2, (channels2,), dtype=jnp.float32)
    beta2 = 0.1 * jax.random.normal(kb2, (channels2,), dtype=jnp.float32)

    y2 = jax.block_until_ready(rsf_bn(x2, gamma2, beta2, rs_num2))
    y2_ref = rsf_bn_reference(x2, gamma2, beta2, rs_num2)
    assert y2.shape == (N2, C2, H2, W2)
    assert jnp.allclose(y2, y2_ref, atol=1e-4, rtol=1e-4), "mismatch vs reference (test 2)"

    print("KERNEL_OK")
</pallas_src>

<mosaic_0001>
module attributes {stable_mosaic.version = 11 : i64} {
  func.func @_rsf_bn_kernel(%arg0: i32, %arg1: memref<4xf32, #tpu.memory_space<smem>>, %arg2: memref<4xf32, #tpu.memory_space<smem>>, %arg3: memref<2x1x8x128xf32, #tpu.memory_space<vmem>>, %arg4: memref<2x1x8x128xf32, #tpu.memory_space<vmem>>) attributes {dimension_semantics = [#tpu.dimension_semantics<parallel>], iteration_bounds = array<i64: 4>, scalar_prefetch = 0 : i64, scratch_operands = 0 : i64, tpu.core_type = #tpu.core_type<tc>, window_params = [{transform_indices = @transform_0, window_bounds = array<i64: 4>}, {transform_indices = @transform_1, window_bounds = array<i64: 4>}, {transform_indices = @transform_2, window_bounds = array<i64: 2, 1, 8, 128>}, {transform_indices = @transform_3, window_bounds = array<i64: 2, 1, 8, 128>}]} {
    %0 = arith.index_cast %arg0 : i32 to index
    %1 = memref.load %arg1[%0] : memref<4xf32, #tpu.memory_space<smem>>
    %2 = arith.index_cast %arg0 : i32 to index
    %3 = memref.load %arg2[%2] : memref<4xf32, #tpu.memory_space<smem>>
    %c0 = arith.constant 0 : index
    %c0_0 = arith.constant 0 : index
    %c0_1 = arith.constant 0 : index
    %c0_2 = arith.constant 0 : index
    %4 = vector.load %arg3[%c0, %c0_0, %c0_1, %c0_2] : memref<2x1x8x128xf32, #tpu.memory_space<vmem>>, vector<2x1x8x128xf32>
    %5 = vector.shape_cast %4 : vector<2x1x8x128xf32> to vector<1x2x1x8x128xf32>
    %cst = arith.constant dense<0.000000e+00> : vector<1xf32>
    %6 = vector.multi_reduction <add>, %5, %cst [1, 2, 3, 4] : vector<1x2x1x8x128xf32> to vector<1xf32>
    %7 = vector.shape_cast %6 : vector<1xf32> to vector<1x1x1x1x1xf32>
    %8 = vector.extract %7[0, 0, 0, 0, 0] : f32 from vector<1x1x1x1x1xf32>
    %9 = arith.mulf %4, %4 : vector<2x1x8x128xf32>
    %10 = vector.shape_cast %9 : vector<2x1x8x128xf32> to vector<1x2x1x8x128xf32>
    %cst_3 = arith.constant dense<0.000000e+00> : vector<1xf32>
    %11 = vector.multi_reduction <add>, %10, %cst_3 [1, 2, 3, 4] : vector<1x2x1x8x128xf32> to vector<1xf32>
    %12 = vector.shape_cast %11 : vector<1xf32> to vector<1x1x1x1x1xf32>
    %13 = vector.extract %12[0, 0, 0, 0, 0] : f32 from vector<1x1x1x1x1xf32>
    %cst_4 = arith.constant 4.8828125E-4 : f32
    %14 = arith.mulf %8, %cst_4 : f32
    %cst_5 = arith.constant 4.8828125E-4 : f32
    %15 = arith.mulf %13, %cst_5 : f32
    %16 = arith.mulf %14, %14 : f32
    %17 = arith.subf %15, %16 : f32
    %cst_6 = arith.constant 0.000000e+00 : f32
    %18 = arith.maximumf %17, %cst_6 : f32
    %cst_7 = arith.constant 9.99999974E-6 : f32
    %19 = arith.addf %18, %cst_7 : f32
    %20 = math.rsqrt %19 : f32
    %21 = arith.mulf %20, %1 : f32
    %22 = arith.mulf %14, %21 : f32
    %23 = arith.subf %3, %22 : f32
    %24 = vector.broadcast %21 : f32 to vector<2x1x8x128xf32>
    %25 = arith.mulf %4, %24 : vector<2x1x8x128xf32>
    %26 = vector.broadcast %23 : f32 to vector<2x1x8x128xf32>
    %27 = arith.addf %25, %26 : vector<2x1x8x128xf32>
    %c0_8 = arith.constant 0 : index
    %c0_9 = arith.constant 0 : index
    %c0_10 = arith.constant 0 : index
    %c0_11 = arith.constant 0 : index
    %28 = vector.load %arg4[%c0_8, %c0_9, %c0_10, %c0_11] : memref<2x1x8x128xf32, #tpu.memory_space<vmem>>, vector<2x1x8x128xf32>
    tpu.vector_store %arg4[%c0_8, %c0_9, %c0_10, %c0_11], %27 {strides = array<i32>} : memref<2x1x8x128xf32, #tpu.memory_space<vmem>>, vector<2x1x8x128xf32>,
    return
  }
  func.func @transform_0(%arg0: i32) -> i32 {
    %c0_i32 = arith.constant 0 : i32
    %c0_i32_0 = arith.constant 0 : i32
    return %c0_i32 : i32
  }
  func.func @transform_1(%arg0: i32) -> i32 {
    %c0_i32 = arith.constant 0 : i32
    %c0_i32_0 = arith.constant 0 : i32
    return %c0_i32 : i32
  }
  func.func @transform_2(%arg0: i32) -> (i32, i32, i32, i32) {
    %c0_i32 = arith.constant 0 : i32
    %c0_i32_0 = arith.constant 0 : i32
    %c0_i32_1 = arith.constant 0 : i32
    %c0_i32_2 = arith.constant 0 : i32
    return %c0_i32, %arg0, %c0_i32_0, %c0_i32_1 : i32, i32, i32, i32
  }
  func.func @transform_3(%arg0: i32) -> (i32, i32, i32, i32) {
    %c0_i32 = arith.constant 0 : i32
    %c0_i32_0 = arith.constant 0 : i32
    %c0_i32_1 = arith.constant 0 : i32
    %c0_i32_2 = arith.constant 0 : i32
    return %c0_i32, %arg0, %c0_i32_0, %c0_i32_1 : i32, i32, i32, i32
  }
}

</mosaic_0001>

<bundles_post_ra>
// kernel: tpu_custom_call.1
= control target key start
LH: loop header
LB: loop body
LE: loop exit
PB: predicated region body
PF: predicated region fallthrough
CT: control target
= control target key end

     0   :  { %8 = vsyncpa [#allocation5], 0  ;;  %s820_s0 = inlined_call_operand.hbm [shape: f32[4], index: 0, kind: input, shape index: {}]   ;;  %s821_s1 = inlined_call_operand.vmem [shape: f32[4], index: 1, kind: input, shape index: {}]   ;;  %s822_s2 = inlined_call_operand.hbm [shape: f32[2,4,8,128], index: 2, kind: input, shape index: {}]   ;;  %s823_s3 = inlined_call_operand.hbm [shape: f32[2,4,8,128], index: 3, kind: output, shape index: {}]  }
   0x1   :  { %9 = vsyncpa [#allocation6], 0 }
   0x2   :  { %10 = vsyncpa [#allocation3], 0 }
   0x3   :  { %12 = vsyncpa [#allocation3 + $0x1], 0 }
   0x4   :  { %13 = vsyncpa [#allocation4], 0 }
   0x5   :  { %15 = vsyncpa [#allocation4 + $0x1], 0  ;;  %s626_s12 = smov 0   ;;  %s628_s13 = smov 0  }
   0x6   :  { %s630_s14 = smov 0   ;;  %s632_s15 = smov 0  }
   0x7 LB: > { %s647_s16 = sadd.s32 4294967295, %s593_s15   ;;  %s369_s17 = sadd.s32 4294967294, %s593_s15   ;;  %s593_s15 = sphi %s632_s15, %s846_s15   ;;  %s589_s14 = sphi %s630_s14, %s845_s14   ;;  %s585_s13 = sphi %s628_s13, %s844_s13   ;;  %s581_s12 = sphi %s626_s12, %s843_s12  }
   0x8   : > { %s651_s18 = sadd.s32 1, %s593_s15   ;;  %s70_s19 = sadd.s32 1, %s589_s14 }
   0x9   : > { %s67_s20 = ssub.s32 %s593_s15, %s651_s18  ;;  %p77_p0 = scmp.ne.s32.totalorder %s589_s14, %s585_s13 }
   0xa   : > { %p68_p1 = scmp.eq.s32.totalorder %s67_s20, 0  ;;  %p78_p2 = scmp.eq.s32.totalorder %s593_s15, 0 }
   0xb   : > { %p83_p3 = scmp.ne.s32.totalorder %s585_s13, %s581_s12  ;;  %p824_p4 = scmp.eq.s32.totalorder %s647_s16, 0 }
   0xc   : > { %s663_s21 = scalar_select %p68_p1, %s589_s14, %s70_s19  }
   0xd   : > { %p665_p5 = por %p78_p2, %p77_p0  ;;  %p671_p6 = por %p824_p4, %p83_p3 }
   0xe   : > { %p107_p7 = scmp.eq.s32.totalorder %s647_s16, 3  ;;  %p113_p8 = scmp.eq.s32.totalorder %s369_s17, 3 }
   0xf   : > { %s829_s23 = scalar_select %p671_p6, 1, 0 }
  0x10   : > { %p370_p9 = scmp.ge.s32.totalorder %s593_s15, 1  ;;  %p120_p10 = scmp.lt.s32.totalorder %s593_s15, 5 }
  0x11   : > { %p678_p11 = por %p107_p7, %p77_p0  ;;  %p682_p12 = por %p113_p8, %p83_p3 }
  0x12   : > { %p686_p13 = pnand %p370_p9, %p120_p10  ;;  %p420_p2 = scmp.lt.s32.totalorder %s593_s15, 4 }
  0x13   : > { %s830_s24 = scalar_select %p678_p11, 1, 0 }
  0x14   : > { %s831_s25 = scalar_select %p682_p12, 1, 0 }
  0x15   : > { %s832_s26 = scalar_select %p686_p13, 1, 0 }
  0x16   : > { %p403_p1 = pneg %p686_p13  ;;  %s142_s29 = sshll.u32 %s821_s1, 4  ;;  %s143_s29 = int_to_ptr.vmem [resolvable:$true] %s142_s29 }
  0x17   : > { %p704_p3 = pnand %p420_p2, %p665_p5  ;;  %s153_s5 = sand.u32 1, %s589_s14  }
  0x18   : > { %p698_p0 = pnand %p403_p1, %p824_p4  ;;  %s595_s6 = smov [#allocation2]  }
  0x19   : > { %s478_s9 = scalar_lea.vmem %s143_s29, 16  ;;  %p486_p1 = scmp.lt.s32.totalorder %s143_s29, %s143_s29 }
  0x1a   : > { %406 = dma.hbm_to_smem (!%p698_p0), %s820_s0, 16, %s595_s6, [#allocation5]  }
  0x1b   : > { %p479_p7 = scmp.ne.s32.totalorder %s143_s29, %s478_s9  ;;  %p480_p8 = pneg %p698_p0 }
  0x1c   : > { %p487_p4 = scmp.lt.s32.totalorder %s478_s9, %s478_s9 }
  0x1d   : > { %p481_p9 = pnand %p480_p8, %p479_p7 }
  0x1e   : > { %p488_p5 = por %p487_p4, %p486_p1 }
  0x1f   : > { %p482_p10 = pneg %p481_p9 }
  0x21   : > { %p489_p2 = pnand %p488_p5, %p482_p10 }
  0x23   : > { %492 = shalt.err (!%p489_p2)
}
  0x24   : > { %s596_s10 = smov [#allocation7]   ;;  %s374_s11 = sshll.u32 %s153_s5, 4 }
  0x25   : > { %409 = dma.vmem_to_smem (!%p698_p0), %s143_s29, 16, %s596_s10, [#allocation6]  }
  0x26   : > { %s375_s17 = sshll.u32 %s593_s15, 7  ;;  %s157_s27 = scalar_lea.vmem [#allocation8], %s374_s11 }
  0x27   : > { %s722_s22 = scalar_lea.hbm %s822_s2, %s375_s17  ;;  %s163_s28 = sshll.u32 %s157_s27, 4  ;;  %s724_s28 = int_to_ptr.vmem [resolvable:$true] %s163_s28 }
  0x28   : > { %s726_s6 = scalar_lea.sflag [#allocation3], %s153_s5  ;;  %s493_s30 = scalar_lea.hbm %s722_s22, 256 }
  0x29   : > { %p494_p4 = scmp.ne.s32.totalorder %s722_s22, %s493_s30  ;;  %p495_p0 = pneg %p704_p3 }
  0x2a   : > { %s498_s8 = scalar_lea.hbm %s822_s2, 1024  ;;  %p499_p9 = scmp.lt.s32.totalorder %s722_s22, %s822_s2 }
  0x2b   : > { %p496_p7 = pnand %p495_p0, %p494_p4  ;;  %p500_p10 = scmp.lt.s32.totalorder %s498_s8, %s493_s30 }
  0x2d   : > { %p497_p8 = pneg %p496_p7  ;;  %p501_p1 = por %p500_p10, %p499_p9 }
  0x2f   : > { %p502_p5 = pnand %p501_p1, %p497_p8 }
  0x31   : > { %505 = shalt.err (!%p502_p5)
}
  0x32   : > { %s506_s5 = scalar_lea.vmem %s724_s28, 256  ;;  %s597_s11 = smov [#allocation8]  }
  0x33   : > { %p507_p2 = scmp.ne.s32.totalorder %s724_s28, %s506_s5  ;;  %s511_s17 = sshll.u32 %s597_s11, 4  ;;  %s512_s17 = int_to_ptr.vmem [resolvable:$false] %s511_s17 }
  0x34   : > { %s513_s19 = scalar_lea.vmem %s512_s17, 512  ;;  %p514_p7 = scmp.lt.s32.totalorder %s724_s28, %s512_s17 }
  0x35   : > { %p509_p12 = pnand %p507_p2, %p495_p0  ;;  %p515_p11 = scmp.lt.s32.totalorder %s513_s19, %s506_s5 }
  0x37   : > { %p510_p4 = pneg %p509_p12  ;;  %p516_p6 = por %p515_p11, %p514_p7 }
  0x39   : > { %p517_p13 = pnand %p516_p6, %p510_p4 }
  0x3b   : > { %520 = shalt.err (!%p517_p13)
}
  0x3c   : > { %s598_s20 = smov 512   ;;  %s599_s27 = smov 128  }
  0x3d   : > { %s600_s30 = smov 8   ;;  %p835_p12 = scmp.ne.s32.totalorder %s832_s26, 0 }
  0x3e   : > { %413 = dma.hbm_to_vmem [thread:$0]  (!%p704_p3), %s722_s22, 256, %s724_s28, %s726_s6, %s598_s20, %s599_s27, %s600_s30  }
  0x3f   : > { %175 = sbr.rel (%p835_p12) target bundleno = 382 (0x17e), region = 32  ;;  %p836_p0 = scmp.eq.s32.totalorder (!%p835_p12), %s647_s16, 0 }
  0x44   : > { %564 = dma.done.wait (%p836_p0), [#allocation5], 16   ;;  %p837_p8 = pmov %p836_p0 }
  0x45   : > { %p838_p6 = pmov %p836_p0 }
  0x46   : > { %566 = vsyncadd (%p837_p8), [#allocation5], 4294967280 }
  0x47   : > { %568 = dma.done.wait (%p838_p6), [#allocation6], 16   ;;  %p839_p11 = pmov %p836_p0 }
  0x48   : > { %s758_s29 = sand.u32 1, %s585_s13   ;;  %p840_p13 = scmp.ne.s32.totalorder %s829_s23, 0 }
  0x49   : > { %570 = vsyncadd (%p839_p11), [#allocation6], 4294967280  ;;  %s379_s26 = sshll.u32 %s758_s29, 4  ;;  %s186_s4 = scalar_lea.sflag [#allocation3], %s758_s29 }
  0x4a   : > { %s189_s22 = scalar_lea.vmem [#allocation8], %s379_s26 }
  0x4b   : > { %572 = dma.done.wait (%p840_p13), %s186_s4, 256  }
  0x4c   : > { %574 = vsyncadd (%p840_p13), %s186_s4, 4294967040 }
  0x4d   : > { %194 = sfence }
  0x4e   : > { %v215_v0 = vld [vmem:[%s189_s22] sm:$0xff]  ;;  %v216_v1 = vld [vmem:[%s189_s22 + $0x8] sm:$0xff]  ;;  %s601_s10 = smov 0.0   ;;  %s213_s17 = sld [smem:[#allocation2 + %s647_s16]] }
  0x4f   : > { %v217_v2 = vadd.f32 %v216_v1, %v215_v0  ;;  %v227_v3 = vmul.f32 %v215_v0, %v215_v0  ;;  %v228_v4 = vmul.f32 %v216_v1, %v216_v1  ;;  %s214_s19 = sld [smem:[#allocation7 + %s647_s16]]  ;;  %s212_s4 = scalar_lea.vmem [#allocation9], %s379_s26 }
  0x50   : > { %s272_s22 = sshll.u32 %s212_s4, 4  ;;  %s260_s26 = scalar_lea.sflag [#allocation4], %s758_s29  ;;  %s773_s22 = int_to_ptr.vmem [resolvable:$true] %s272_s22 }
  0x51   : > { %218 = vadd.xlane.f32.xlu0 %v217_v2  ;;  %v229_v5 = vadd.f32 %v228_v4, %v227_v3  ;;  %p841_p9 = scmp.ne.s32.totalorder %s830_s24, 0 }
  0x55   : > { %230 = vadd.xlane.f32.xlu0 %v229_v5 }
  0xda   : > { %v219_v6 = vpop.xlane.xlu0 %218 }
  0xdb   : > { %v220_v7 = vrot.slane %v219_v6, 4 }
  0xdd   : > { %v221_v8 = vadd.f32 %v220_v7, %v219_v6 }
  0xde   : > { %v231_v9 = vpop.xlane.xlu0 %230 }
  0xdf   : > { %v222_v10 = vrot.slane %v221_v8, 2  ;;  %v232_v11 = vrot.slane %v231_v9, 4 }
  0xe1   : > { %v233_v12 = vadd.f32 %v232_v11, %v231_v9  ;;  %v223_v13 = vadd.f32 %v222_v10, %v221_v8 }
  0xe3   : > { %v234_v14 = vrot.slane %v233_v12, 2  ;;  %v224_v15 = vrot.slane %v223_v13, 1 }
  0xe5   : > { %v235_v16 = vadd.f32 %v234_v14, %v233_v12  ;;  %v225_v17 = vadd.f32 %v224_v15, %v223_v13 }
  0xe7   : > { %385 = vpush %v225_v17  ;;  %v236_v18 = vrot.slane %v235_v16, 1 }
  0xe9   : > { %v237_v19 = vadd.f32 %v236_v18, %v235_v16 }
  0xeb   : > { %387 = vpush %v237_v19 }
 0x118   : > { %s386_s23 = spop %385 }
 0x119   : > { %s239_s28 = smul.f32 0.00048828125, %s386_s23  ;;  %s382_s23 = sshll.u32 %s647_s16, 7 }
 0x11a   : > { %s521_s16 = scalar_lea.vmem %s773_s22, 256 }
 0x11b   : > { %s241_s6 = smul.f32 %s239_s28, %s239_s28  ;;  %p522_p3 = scmp.ne.s32.totalorder %s773_s22, %s521_s16 }
 0x11c   : > { %s388_s7 = spop %387 }
 0x11d   : > { %s240_s8 = smul.f32 0.00048828125, %s388_s7  ;;  %p523_p10 = pnand %p522_p3, %p841_p9 }
 0x11f   : > { %s242_s9 = ssub.f32 %s240_s8, %s241_s6  ;;  %p524_p1 = pneg %p523_p10 }
 0x121   : > { %s243_s5 = smax.f32 %s601_s10, %s242_s9  ;;  %s778_s9 = scalar_lea.hbm %s823_s3, %s382_s23 }
 0x122   : > { %s244_s11 = sadd.f32 1e-05, %s243_s5 }
 0x124   : > { %v245_v20 = vstv %s244_s11 }
 0x125   : > { %465 = vrsqrt.f32 %v245_v20 }
 0x132   : > { %v466_v21 = vpop.eup %465 }
 0x133   : > { %389 = vpush %v466_v21 }
 0x164   : > { %s390_s20 = spop %389 }
 0x165   : > { %s248_s27 = smul.f32 %s390_s20, %s213_s17 }
 0x167   : > { %s249_s30 = smul.f32 %s248_s27, %s239_s28  ;;  %v251_v22 = vstv %s248_s27  ;;  %s602_s28 = smov [#allocation9]  }
 0x168   : > { %v252_v23 = vmul.f32 %v251_v22, %v215_v0  ;;  %v253_v24 = vmul.f32 %v251_v22, %v216_v1  ;;  %s525_s10 = sshll.u32 %s602_s28, 4  ;;  %s526_s10 = int_to_ptr.vmem [resolvable:$false] %s525_s10 }
 0x169   : > { %s250_s6 = ssub.f32 %s214_s19, %s249_s30  ;;  %s527_s5 = scalar_lea.vmem %s526_s10, 512 }
 0x16a   : > { %p528_p5 = scmp.lt.s32.totalorder %s773_s22, %s526_s10  ;;  %p529_p2 = scmp.lt.s32.totalorder %s527_s5, %s521_s16 }
 0x16b   : > { %v254_v25 = vstv %s250_s6 }
 0x16c   : > { %v255_v26 = vadd.f32 %v254_v25, %v252_v23  ;;  %v256_v27 = vadd.f32 %v254_v25, %v253_v24  ;;  %p530_p4 = por %p529_p2, %p528_p5 }
 0x16e   : > { %257 = vst [vmem:[%s212_s4] sm:$0xff] %v255_v26  ;;  %258 = vst [vmem:[%s212_s4 + $0x8] sm:$0xff] %v256_v27  ;;  %p531_p7 = pnand %p530_p4, %p524_p1 }
 0x170   : > { %534 = shalt.err (!%p531_p7)
}
 0x171   : > { %s535_s11 = scalar_lea.hbm %s778_s9, 256  ;;  %s539_s20 = scalar_lea.hbm %s823_s3, 1024 }
 0x172   : > { %p536_p12 = scmp.ne.s32.totalorder %s778_s9, %s535_s11  ;;  %p540_p6 = scmp.lt.s32.totalorder %s778_s9, %s823_s3 }
 0x173   : > { %p541_p11 = scmp.lt.s32.totalorder %s539_s20, %s535_s11 }
 0x174   : > { %p537_p0 = pnand %p536_p12, %p841_p9 }
 0x175   : > { %p542_p13 = por %p541_p11, %p540_p6 }
 0x176   : > { %p538_p8 = pneg %p537_p0 }
 0x178   : > { %p543_p3 = pnand %p542_p13, %p538_p8 }
 0x17a   : > { %546 = shalt.err (!%p543_p3)
}
 0x17b   : > { %s603_s4 = smov 128   ;;  %s604_s23 = smov 512  }
 0x17c   : > { %s605_s6 = smov 8  }
 0x17d   : > { %401 = dma.vmem_to_hbm [thread:$0]  (%p841_p9), %s773_s22, 256, %s778_s9, %s260_s26, %s603_s4, %s604_s23, %s605_s6  }
 0x17e PF: > { %p423_p10 = scmp.ge.s32.totalorder %s593_s15, 2  ;;  %s287_s7 = sand.u32 1, %s581_s12  }
 0x17f   : > { %p842_p1 = scmp.ne.s32.totalorder %s831_s25, 0  ;;  %s288_s8 = scalar_lea.sflag [#allocation4], %s287_s7 }
 0x181   : > { %p415_p5 = pnand %p423_p10, %p842_p1 }
 0x183   : > { %p416_p2 = pneg %p415_p5 }
 0x185   : > { %576 = dma.done.wait (%p416_p2), %s288_s8, 256  }
 0x186   : > { %578 = vsyncadd (%p416_p2), %s288_s8, 4294967040  ;;  %p18_p4 = scmp.ge.s32.totalorder %s651_s18, 6   ;;  %s843_s12 = smov %s585_s13 }
 0x187   : > { %s844_s13 = smov %s589_s14  ;;  %s845_s14 = smov %s663_s21 }
 0x188   : > { %s846_s15 = smov %s651_s18  ;;  %20 = sbr.rel (!%p18_p4) target bundleno = 7 (0x7), region = 87 }
 0x18d   :  { %293 = vsyncpa [#allocation3], 1 }
 0x18e   :  { %295 = vsyncpa [#allocation3 + $0x1], 1 }
 0x18f   :  { %296 = vsyncpa [#allocation4], 1 }
 0x190   :  { %298 = vsyncpa [#allocation4 + $0x1], 1 }
 0x191   :  { %299 = vsyncpa [#allocation5], 1 }
 0x192   :  { %301 = vsyncpa [#allocation5 + $0x1], 1 }
 0x193   :  { %302 = vsyncpa [#allocation6], 1 }
 0x194   :  { %304 = vsyncpa [#allocation6 + $0x1], 1 }

</bundles_post_ra>
